<compile_context>
chip_gen: v7x
topology: tpu7x:2x2x1
jax: 0.10.0
libtpu: 0.0.40
codegen_flags: <defaults>
</compile_context>

<pallas_src>
import math
from functools import lru_cache

import jax
import jax.numpy as jnp
from jax.experimental import pallas as pl
from jax.experimental.pallas import tpu as pltpu


# ----------------------------- activations / helpers --------------------------

def _silu(x):
    return x * jax.nn.sigmoid(x)


def _gelu_tanh(x):
    c = math.sqrt(2.0 / math.pi)
    return 0.5 * x * (1.0 + jnp.tanh(c * (x + 0.044715 * x * x * x)))


def _gelu_exact(x):
    return 0.5 * x * (1.0 + jax.lax.erf(x / math.sqrt(2.0)))


def _round_up(x, m):
    return ((x + m - 1) // m) * m


@lru_cache(maxsize=1)
def _tpu_budget():
    """(vmem_limit_bytes, max_row_tile) chosen per TPU generation."""
    phys = 64 * 1024 * 1024                      # conservative default (v7x per-TC)
    try:
        info = pltpu.get_tpu_info()
        phys = int(getattr(info, "vmem_capacity_bytes", phys))
    except Exception:
        pass
    # Leave headroom under physical VMEM; never below the 32 MiB scoped default.
    limit = max(32 * 1024 * 1024, min(phys * 3 // 4, 100 * 1024 * 1024))
    # 128 MiB parts (v5e/v6e) -> 512-row tiles; 64 MiB (v7x) -> 256-row tiles.
    max_rows = 512 if phys >= 96 * 1024 * 1024 else 256
    return limit, max_rows


def _row_tile(n, max_tile):
    """Sublane-multiple row tile that keeps padding small (< 8 rows per tile)."""
    n8 = _round_up(max(n, 8), 8)
    if n8 <= max_tile:
        return n8
    n_tiles = pl.cdiv(n8, max_tile)
    return _round_up(pl.cdiv(n8, n_tiles), 8)


def _col_tile(d, max_tile):
    """Lane-dim tile: a 128-multiple that divides d, or d itself."""
    if d <= max_tile:
        return d
    if d % 128 == 0:
        start = max_tile - (max_tile % 128)
        for t in range(start, 0, -128):
            if d % t == 0:
                return t
    return d


# ----------------------------- Pallas kernels ---------------------------------

def time_embed_kernel(t_ref, te_w1_ref, te_b1_ref, te_w2_ref, te_b2_ref,
                      tp_w_ref, tp_b_ref, temb_ref, tproj_ref, act_sc):
    # Tiny 8-row path: linear -> silu -> linear -> (silu) -> linear.
    # Grid axis tiles the time_proj output columns; temb and the silu(temb)
    # activation are computed once at step 0 and kept resident.
    @pl.when(pl.program_id(0) == 0)
    def _():
        t = t_ref[...].astype(jnp.bfloat16)
        h = _silu(jnp.dot(t, te_w1_ref[...],
                          preferred_element_type=jnp.float32) + te_b1_ref[...])
        temb = jnp.dot(h.astype(jnp.bfloat16), te_w2_ref[...],
                       preferred_element_type=jnp.float32) + te_b2_ref[...]
        temb_ref[...] = temb
        act_sc[...] = _silu(temb).astype(jnp.bfloat16)

    tproj_ref[...] = (jnp.dot(act_sc[...], tp_w_ref[...],
                              preferred_element_type=jnp.float32)
                      + tp_b_ref[...])


def text_proj_kernel(x_ref, w1_ref, b1_ref, w2_ref, b2_ref, o_ref, acc_ref):
    # PixArtAlphaTextProjection: linear -> gelu(tanh) -> linear.
    # Grid: (row tiles [parallel], hidden-dim tiles [arbitrary reduction]).
    k = pl.program_id(1)

    @pl.when(k == 0)
    def _():
        acc_ref[...] = jnp.zeros_like(acc_ref)

    h = jnp.dot(x_ref[...], w1_ref[...],
                preferred_element_type=jnp.float32) + b1_ref[...]
    h = _gelu_tanh(h)
    acc_ref[...] += jnp.dot(h.astype(jnp.bfloat16), w2_ref[...],
                            preferred_element_type=jnp.float32)

    @pl.when(k == pl.num_programs(1) - 1)
    def _():
        o_ref[...] = (acc_ref[...] + b2_ref[...]).astype(o_ref.dtype)


def image_embed_kernel(x_ref, g1_ref, be1_ref, w1_ref, b1_ref, w2_ref, b2_ref,
                       g2_ref, be2_ref, o_ref):
    # WanImageEmbedding under bf16 autocast:
    #   FP32LayerNorm -> FF (bf16 matmuls, fp32 epilogue) -> FP32LayerNorm.
    eps = 1e-5
    x = x_ref[...].astype(jnp.float32)                         # bf16 stream -> fp32 LN
    mu = jnp.mean(x, axis=-1, keepdims=True)
    var = jnp.mean(x * x, axis=-1, keepdims=True) - mu * mu    # E[x^2] - mu^2
    h = (x - mu) * jax.lax.rsqrt(var + eps) * g1_ref[...] + be1_ref[...]

    y1 = jnp.dot(h.astype(jnp.bfloat16), w1_ref[...],
                 preferred_element_type=jnp.float32)
    y1 = _gelu_exact(y1 + b1_ref[...])                         # fp32 epilogue
    y2 = jnp.dot(y1.astype(jnp.bfloat16), w2_ref[...],
                 preferred_element_type=jnp.float32) + b2_ref[...]

    mu2 = jnp.mean(y2, axis=-1, keepdims=True)
    var2 = jnp.mean(y2 * y2, axis=-1, keepdims=True) - mu2 * mu2
    z = (y2 - mu2) * jax.lax.rsqrt(var2 + eps) * g2_ref[...] + be2_ref[...]
    o_ref[...] = z.astype(o_ref.dtype)


# ----------------------------- wrappers ---------------------------------------

def _sinusoidal_timestep_embedding(timesteps, num_channels,
                                   flip_sin_to_cos=True,
                                   downscale_freq_shift=0.0,
                                   max_period=10000.0):
    # diffusers.get_timestep_embedding semantics (plain-JAX glue, not hot path).
    half = num_channels // 2
    exponent = -math.log(max_period) * jnp.arange(half, dtype=jnp.float32)
    exponent = exponent / (half - downscale_freq_shift)
    freqs = jnp.exp(exponent)
    args = timesteps.astype(jnp.float32)[:, None] * freqs[None, :]
    emb = jnp.concatenate([jnp.sin(args), jnp.cos(args)], axis=-1)
    if flip_sin_to_cos:
        emb = jnp.concatenate([emb[:, half:], emb[:, :half]], axis=-1)
    return emb  # (B, num_channels) fp32


def time_embedding_call(t_emb_pad, te_w1, te_b1, te_w2, te_b2, tp_w, tp_b):
    vmem_limit, _ = _tpu_budget()
    Bp, F = t_emb_pad.shape
    D = te_w2.shape[1]
    P = tp_w.shape[1]

    # Pad the sinusoid width (MXU K of the first GEMM) to a 128 multiple.
    Fp = _round_up(F, 128)
    if Fp != F:
        t_emb_pad = jnp.pad(t_emb_pad, ((0, 0), (0, Fp - F)))
        te_w1 = jnp.pad(te_w1, ((0, Fp - F), (0, 0)))

    tp_tile = _col_tile(P, 1024)
    const = lambda j: (0, 0)

    temb, tproj = pl.pallas_call(
        time_embed_kernel,
        out_shape=(jax.ShapeDtypeStruct((Bp, D), jnp.float32),
                   jax.ShapeDtypeStruct((Bp, P), jnp.float32)),
        grid=(P // tp_tile,),
        in_specs=[pl.BlockSpec((Bp, Fp), const),
                  pl.BlockSpec(te_w1.shape, const),
                  pl.BlockSpec(te_b1.shape, const),
                  pl.BlockSpec(te_w2.shape, const),
                  pl.BlockSpec(te_b2.shape, const),
                  pl.BlockSpec((D, tp_tile), lambda j: (0, j)),
                  pl.BlockSpec((1, tp_tile), lambda j: (0, j))],
        out_specs=(pl.BlockSpec((Bp, D), const),          # resident, written at j==0
                   pl.BlockSpec((Bp, tp_tile), lambda j: (0, j))),
        scratch_shapes=[pltpu.VMEM((Bp, D), jnp.bfloat16)],
        compiler_params=pltpu.CompilerParams(
            dimension_semantics=("arbitrary",),            # temb block is grid-resident
            vmem_limit_bytes=vmem_limit),
    )(t_emb_pad, te_w1, te_b1, te_w2, te_b2, tp_w, tp_b)
    return temb, tproj


def text_projection_call(x, w1, b1, w2, b2):
    vmem_limit, max_rows = _tpu_budget()
    Bt, S, Dt = x.shape
    D = w2.shape[1]
    N = Bt * S
    tm = _row_tile(N, max_rows)
    N_pad = pl.cdiv(N, tm) * tm
    tkd = _col_tile(D, 512)                                # hidden-dim reduction tile

    xf = x.reshape(N, Dt).astype(jnp.bfloat16)             # stream activations in bf16
    if N_pad != N:
        xf = jnp.pad(xf, ((0, N_pad - N), (0, 0)))

    cost = pl.CostEstimate(
        flops=2 * N_pad * D * (Dt + D),
        transcendentals=N_pad * D,
        bytes_accessed=(N_pad * Dt * 2 + Dt * D * 2 + D * D * 2
                        + 2 * D * 4 + N_pad * D * 2))

    txt = pl.pallas_call(
        text_proj_kernel,
        out_shape=jax.ShapeDtypeStruct((N_pad, D), jnp.bfloat16),
        grid=(N_pad // tm, D // tkd),
        in_specs=[pl.BlockSpec((tm, Dt), lambda i, k: (i, 0)),
                  pl.BlockSpec((Dt, tkd), lambda i, k: (0, k)),
                  pl.BlockSpec((1, tkd), lambda i, k: (0, k)),
                  pl.BlockSpec((tkd, D), lambda i, k: (k, 0)),
                  pl.BlockSpec((1, D), lambda i, k: (0, 0))],
        out_specs=pl.BlockSpec((tm, D), lambda i, k: (i, 0)),
        scratch_shapes=[pltpu.VMEM((tm, D), jnp.float32)],
        compiler_params=pltpu.CompilerParams(
            dimension_semantics=("parallel", "arbitrary"),  # rows megacore-shard on v7x
            vmem_limit_bytes=vmem_limit),
        cost_estimate=cost,
    )(xf, w1, b1, w2, b2)

    return txt[:N].reshape(Bt, S, D)


def image_embedding_call(x, g1, be1, w1, b1, w2, b2, g2, be2):
    vmem_limit, max_rows = _tpu_budget()
    B, S, Di = x.shape
    D = w2.shape[1]
    N = B * S
    tm = _row_tile(N, max_rows)
    N_pad = pl.cdiv(N, tm) * tm

    xf = x.reshape(N, Di).astype(jnp.bfloat16)              # stream in bf16; LN upcasts
    if N_pad != N:
        xf = jnp.pad(xf, ((0, N_pad - N), (0, 0)))

    cost = pl.CostEstimate(
        flops=2 * N_pad * Di * (Di + D),
        transcendentals=N_pad * Di,
        bytes_accessed=(N_pad * Di * 2 + Di * Di * 2 + Di * D * 2
                        + N_pad * D * 2))

    const = lambda i: (0, 0)
    out = pl.pallas_call(
        image_embed_kernel,
        out_shape=jax.ShapeDtypeStruct((N_pad, D), jnp.bfloat16),
        grid=(N_pad // tm,),
        in_specs=[pl.BlockSpec((tm, Di), lambda i: (i, 0)),
                  pl.BlockSpec(g1.shape, const),
                  pl.BlockSpec(be1.shape, const),
                  pl.BlockSpec(w1.shape, const),
                  pl.BlockSpec(b1.shape, const),
                  pl.BlockSpec(w2.shape, const),
                  pl.BlockSpec(b2.shape, const),
                  pl.BlockSpec(g2.shape, const),
                  pl.BlockSpec(be2.shape, const)],
        out_specs=pl.BlockSpec((tm, D), lambda i: (i, 0)),
        compiler_params=pltpu.CompilerParams(
            dimension_semantics=("parallel",),
            vmem_limit_bytes=vmem_limit),
        cost_estimate=cost,
    )(xf, g1, be1, w1, b1, w2, b2, g2, be2)
    return out[:N].reshape(B, S, D)


# ----------------------------- module-level forward ----------------------------

def wan_time_text_image_embedding(params, timestep, encoder_hidden_states,
                                  encoder_hidden_states_image=None):
    B = timestep.shape[0]
    # 1) Timesteps projection (sinusoidal, fp32) — plain-JAX glue; rows padded
    #    to a sublane multiple so the in-kernel GEMVs are not 2-row ops.
    t_emb = _sinusoidal_timestep_embedding(timestep, params["time_freq_dim"])
    B_pad = _round_up(max(B, 8), 8)
    if B_pad != B:
        t_emb = jnp.pad(t_emb, ((0, B_pad - B), (0, 0)))

    # 2) TimestepEmbedding + SiLU + time_proj — tiny dedicated kernel.
    temb_p, tproj_p = time_embedding_call(
        t_emb,
        params["te_w1"], params["te_b1"],
        params["te_w2"], params["te_b2"],
        params["tp_w"], params["tp_b"])
    # temb.type_as(encoder_hidden_states); time_proj(act_fn(temb)) is computed
    # in fp32 which matches PyTorch when encoder_hidden_states is fp32.
    temb = temb_p[:B].astype(encoder_hidden_states.dtype)
    timestep_proj = tproj_p[:B]

    # 3) PixArtAlphaTextProjection — row-parallel / hidden-reduction kernel.
    #    Output emitted in bf16 (autocast-style policy) to halve writeback.
    enc = text_projection_call(
        encoder_hidden_states,
        params["txt_w1"], params["txt_b1"],
        params["txt_w2"], params["txt_b2"])

    # 4) Image embedder (WanImageEmbedding) — optional, bf16 autocast semantics.
    img = None
    if encoder_hidden_states_image is not None:
        img = image_embedding_call(
            encoder_hidden_states_image,
            params["img_g1"], params["img_be1"],
            params["img_w1"], params["img_b1"],
            params["img_w2"], params["img_b2"],
            params["img_g2"], params["img_be2"])

    return temb, timestep_proj, enc, img


# ----------------------------- parameter init ----------------------------------

def init_params(key, dim, time_freq_dim, time_proj_dim, text_embed_dim,
                image_embed_dim):
    ks = jax.random.split(key, 8)

    def lin(k, din, dout, scale=0.02):
        # bf16 weights (MXU-native), fp32 biases; matmuls accumulate in fp32.
        kw, kb = jax.random.split(k)
        w = (scale * jax.random.normal(kw, (din, dout), jnp.float32)).astype(jnp.bfloat16)
        b = scale * jax.random.normal(kb, (1, dout), jnp.float32)
        return w, b

    p = {"time_freq_dim": time_freq_dim}
    # TimestepEmbedding
    p["te_w1"], p["te_b1"] = lin(ks[0], time_freq_dim, dim)
    p["te_w2"], p["te_b2"] = lin(ks[1], dim, dim)
    # time_proj
    p["tp_w"], p["tp_b"] = lin(ks[2], dim, time_proj_dim)
    # PixArtAlphaTextProjection
    p["txt_w1"], p["txt_b1"] = lin(ks[3], text_embed_dim, dim)
    p["txt_w2"], p["txt_b2"] = lin(ks[4], dim, dim)
    # WanImageEmbedding (LN params fp32, FF weights bf16 per autocast)
    p["img_g1"] = jnp.ones((1, image_embed_dim), jnp.float32)
    p["img_be1"] = jnp.zeros((1, image_embed_dim), jnp.float32)
    p["img_w1"], p["img_b1"] = lin(ks[5], image_embed_dim, image_embed_dim)  # mult=1
    p["img_w2"], p["img_b2"] = lin(ks[6], image_embed_dim, dim)
    p["img_g2"] = jnp.ones((1, dim), jnp.float32)
    p["img_be2"] = jnp.zeros((1, dim), jnp.float32)
    return p


# ----------------------------- main ---------------------------------------------

if __name__ == "__main__":
    # Small but TPU-friendly (lane-dense) shapes.
    B = 2
    dim = 128
    time_freq_dim = 32
    time_proj_dim = 256
    text_embed_dim = 256
    text_seq = 8
    image_embed_dim = 128
    image_seq = 8

    key = jax.random.PRNGKey(0)
    kp, ke, ki = jax.random.split(key, 3)

    params = init_params(kp, dim, time_freq_dim, time_proj_dim,
                         text_embed_dim, image_embed_dim)

    timestep = jnp.array([0.0, 500.0], dtype=jnp.float32)               # (B,)
    encoder_hidden_states = jax.random.normal(
        ke, (B, text_seq, text_embed_dim), jnp.float32)                 # (B, S_txt, Dtxt)
    encoder_hidden_states_image = jax.random.normal(
        ki, (B, image_seq, image_embed_dim), jnp.float32)               # (B, S_img, Dimg)

    temb, timestep_proj, enc, img = wan_time_text_image_embedding(
        params, timestep, encoder_hidden_states, encoder_hidden_states_image)

    jax.block_until_ready((temb, timestep_proj, enc, img))

    assert temb.shape == (B, dim) and temb.dtype == jnp.float32
    assert timestep_proj.shape == (B, time_proj_dim) and timestep_proj.dtype == jnp.float32
    assert enc.shape == (B, text_seq, dim) and enc.dtype == jnp.bfloat16
    assert img.shape == (B, image_seq, dim) and img.dtype == jnp.bfloat16
    assert bool(jnp.all(jnp.isfinite(temb)))
    assert bool(jnp.all(jnp.isfinite(timestep_proj)))
    assert bool(jnp.all(jnp.isfinite(enc.astype(jnp.float32))))
    assert bool(jnp.all(jnp.isfinite(img.astype(jnp.float32))))

    print("KERNEL_OK")
</pallas_src>

<mosaic_0001>
module attributes {stable_mosaic.version = 11 : i64} {
  func.func @time_embed_kernel(%arg0: i32, %arg1: memref<8x128xf32, #tpu.memory_space<vmem>>, %arg2: memref<128x128xbf16, #tpu.memory_space<vmem>>, %arg3: memref<1x128xf32, #tpu.memory_space<vmem>>, %arg4: memref<128x128xbf16, #tpu.memory_space<vmem>>, %arg5: memref<1x128xf32, #tpu.memory_space<vmem>>, %arg6: memref<128x256xbf16, #tpu.memory_space<vmem>>, %arg7: memref<1x256xf32, #tpu.memory_space<vmem>>, %arg8: memref<8x128xf32, #tpu.memory_space<vmem>>, %arg9: memref<8x256xf32, #tpu.memory_space<vmem>>, %arg10: memref<8x128xbf16, #tpu.memory_space<vmem>>) attributes {dimension_semantics = [#tpu.dimension_semantics<arbitrary>], iteration_bounds = array<i64: 1>, scalar_prefetch = 0 : i64, scratch_operands = 1 : i64, tpu.core_type = #tpu.core_type<tc>, window_params = [{pipeline_mode = #tpu.pipeline_mode<synchronous>, transform_indices = @transform_0, window_bounds = array<i64: 8, 128>}, {pipeline_mode = #tpu.pipeline_mode<synchronous>, transform_indices = @transform_1, window_bounds = array<i64: 128, 128>}, {pipeline_mode = #tpu.pipeline_mode<synchronous>, transform_indices = @transform_2, window_bounds = array<i64: 1, 128>}, {pipeline_mode = #tpu.pipeline_mode<synchronous>, transform_indices = @transform_3, window_bounds = array<i64: 128, 128>}, {pipeline_mode = #tpu.pipeline_mode<synchronous>, transform_indices = @transform_4, window_bounds = array<i64: 1, 128>}, {transform_indices = @transform_5, window_bounds = array<i64: 128, 256>}, {transform_indices = @transform_6, window_bounds = array<i64: 1, 256>}, {pipeline_mode = #tpu.pipeline_mode<synchronous>, transform_indices = @transform_7, window_bounds = array<i64: 8, 128>}, {transform_indices = @transform_8, window_bounds = array<i64: 8, 256>}]} {
    %c0_i32 = arith.constant 0 : i32
    %0 = arith.cmpi eq, %arg0, %c0_i32 : i32
    %1 = arith.extui %0 : i1 to i32
    %c0_i32_0 = arith.constant 0 : i32
    %2 = arith.cmpi ne, %1, %c0_i32_0 : i32
    scf.if %2 {
      %c0_8 = arith.constant 0 : index
      %c0_9 = arith.constant 0 : index
      %10 = vector.load %arg1[%c0_8, %c0_9] : memref<8x128xf32, #tpu.memory_space<vmem>>, vector<8x128xf32>
      %11 = arith.truncf %10 : vector<8x128xf32> to vector<8x128xbf16>
      %c0_10 = arith.constant 0 : index
      %c0_11 = arith.constant 0 : index
      %12 = vector.load %arg2[%c0_10, %c0_11] : memref<128x128xbf16, #tpu.memory_space<vmem>>, vector<128x128xbf16>
      %cst_12 = arith.constant dense<0.000000e+00> : vector<8x128xf32>
      %13 = tpu.matmul %11, %12, %cst_12 {dimension_numbers = #tpu.dot_dimension_numbers<[1], [0], [0], [1], [0, 0, 1, 1], [], []>} : vector<8x128xbf16>, vector<128x128xbf16>, vector<8x128xf32> -> vector<8x128xf32>
      %c0_13 = arith.constant 0 : index
      %c0_14 = arith.constant 0 : index
      %14 = vector.load %arg3[%c0_13, %c0_14] : memref<1x128xf32, #tpu.memory_space<vmem>>, vector<1x128xf32>
      %15 = vector.broadcast %14 : vector<1x128xf32> to vector<8x128xf32>
      %16 = arith.addf %13, %15 : vector<8x128xf32>
      %17 = arith.negf %16 : vector<8x128xf32>
      %18 = math.exp %17 : vector<8x128xf32>
      %cst_15 = arith.constant 1.000000e+00 : f32
      %19 = vector.broadcast %cst_15 : f32 to vector<8x128xf32>
      %20 = arith.addf %19, %18 : vector<8x128xf32>
      %21 = arith.divf %19, %20 : vector<8x128xf32>
      %22 = arith.mulf %16, %21 : vector<8x128xf32>
      %23 = arith.truncf %22 : vector<8x128xf32> to vector<8x128xbf16>
      %c0_16 = arith.constant 0 : index
      %c0_17 = arith.constant 0 : index
      %24 = vector.load %arg4[%c0_16, %c0_17] : memref<128x128xbf16, #tpu.memory_space<vmem>>, vector<128x128xbf16>
      %cst_18 = arith.constant dense<0.000000e+00> : vector<8x128xf32>
      %25 = tpu.matmul %23, %24, %cst_18 {dimension_numbers = #tpu.dot_dimension_numbers<[1], [0], [0], [1], [0, 0, 1, 1], [], []>} : vector<8x128xbf16>, vector<128x128xbf16>, vector<8x128xf32> -> vector<8x128xf32>
      %c0_19 = arith.constant 0 : index
      %c0_20 = arith.constant 0 : index
      %26 = vector.load %arg5[%c0_19, %c0_20] : memref<1x128xf32, #tpu.memory_space<vmem>>, vector<1x128xf32>
      %27 = vector.broadcast %26 : vector<1x128xf32> to vector<8x128xf32>
      %28 = arith.addf %25, %27 : vector<8x128xf32>
      %c0_21 = arith.constant 0 : index
      %c0_22 = arith.constant 0 : index
      %29 = vector.load %arg8[%c0_21, %c0_22] : memref<8x128xf32, #tpu.memory_space<vmem>>, vector<8x128xf32>
      tpu.vector_store %arg8[%c0_21, %c0_22], %28 {strides = array<i32>} : memref<8x128xf32, #tpu.memory_space<vmem>>, vector<8x128xf32>,
      %30 = arith.negf %28 : vector<8x128xf32>
      %31 = math.exp %30 : vector<8x128xf32>
      %cst_23 = arith.constant 1.000000e+00 : f32
      %32 = vector.broadcast %cst_23 : f32 to vector<8x128xf32>
      %33 = arith.addf %32, %31 : vector<8x128xf32>
      %34 = arith.divf %32, %33 : vector<8x128xf32>
      %35 = arith.mulf %28, %34 : vector<8x128xf32>
      %36 = arith.truncf %35 : vector<8x128xf32> to vector<8x128xbf16>
      %c0_24 = arith.constant 0 : index
      %c0_25 = arith.constant 0 : index
      %37 = vector.load %arg10[%c0_24, %c0_25] : memref<8x128xbf16, #tpu.memory_space<vmem>>, vector<8x128xbf16>
      tpu.vector_store %arg10[%c0_24, %c0_25], %36 {strides = array<i32>} : memref<8x128xbf16, #tpu.memory_space<vmem>>, vector<8x128xbf16>,
    } else {
    }
    %c0 = arith.constant 0 : index
    %c0_1 = arith.constant 0 : index
    %3 = vector.load %arg10[%c0, %c0_1] : memref<8x128xbf16, #tpu.memory_space<vmem>>, vector<8x128xbf16>
    %c0_2 = arith.constant 0 : index
    %c0_3 = arith.constant 0 : index
    %4 = vector.load %arg6[%c0_2, %c0_3] : memref<128x256xbf16, #tpu.memory_space<vmem>>, vector<128x256xbf16>
    %cst = arith.constant dense<0.000000e+00> : vector<8x256xf32>
    %5 = tpu.matmul %3, %4, %cst {dimension_numbers = #tpu.dot_dimension_numbers<[1], [0], [0], [1], [0, 0, 1, 1], [], []>} : vector<8x128xbf16>, vector<128x256xbf16>, vector<8x256xf32> -> vector<8x256xf32>
    %c0_4 = arith.constant 0 : index
    %c0_5 = arith.constant 0 : index
    %6 = vector.load %arg7[%c0_4, %c0_5] : memref<1x256xf32, #tpu.memory_space<vmem>>, vector<1x256xf32>
    %7 = vector.broadcast %6 : vector<1x256xf32> to vector<8x256xf32>
    %8 = arith.addf %5, %7 : vector<8x256xf32>
    %c0_6 = arith.constant 0 : index
    %c0_7 = arith.constant 0 : index
    %9 = vector.load %arg9[%c0_6, %c0_7] : memref<8x256xf32, #tpu.memory_space<vmem>>, vector<8x256xf32>
    tpu.vector_store %arg9[%c0_6, %c0_7], %8 {strides = array<i32>} : memref<8x256xf32, #tpu.memory_space<vmem>>, vector<8x256xf32>,
    return
  }
  func.func @transform_0(%arg0: i32) -> (i32, i32) {
    %c0_i32 = arith.constant 0 : i32
    %c0_i32_0 = arith.constant 0 : i32
    %c0_i32_1 = arith.constant 0 : i32
    return %c0_i32, %c0_i32_0 : i32, i32
  }
  func.func @transform_1(%arg0: i32) -> (i32, i32) {
    %c0_i32 = arith.constant 0 : i32
    %c0_i32_0 = arith.constant 0 : i32
    %c0_i32_1 = arith.constant 0 : i32
    return %c0_i32, %c0_i32_0 : i32, i32
  }
  func.func @transform_2(%arg0: i32) -> (i32, i32) {
    %c0_i32 = arith.constant 0 : i32
    %c0_i32_0 = arith.constant 0 : i32
    %c0_i32_1 = arith.constant 0 : i32
    return %c0_i32, %c0_i32_0 : i32, i32
  }
  func.func @transform_3(%arg0: i32) -> (i32, i32) {
    %c0_i32 = arith.constant 0 : i32
    %c0_i32_0 = arith.constant 0 : i32
    %c0_i32_1 = arith.constant 0 : i32
    return %c0_i32, %c0_i32_0 : i32, i32
  }
  func.func @transform_4(%arg0: i32) -> (i32, i32) {
    %c0_i32 = arith.constant 0 : i32
    %c0_i32_0 = arith.constant 0 : i32
    %c0_i32_1 = arith.constant 0 : i32
    return %c0_i32, %c0_i32_0 : i32, i32
  }
  func.func @transform_5(%arg0: i32) -> (i32, i32) {
    %c0_i32 = arith.constant 0 : i32
    %c0_i32_0 = arith.constant 0 : i32
    return %c0_i32, %arg0 : i32, i32
  }
  func.func @transform_6(%arg0: i32) -> (i32, i32) {
    %c0_i32 = arith.constant 0 : i32
    %c0_i32_0 = arith.constant 0 : i32
    return %c0_i32, %arg0 : i32, i32
  }
  func.func @transform_7(%arg0: i32) -> (i32, i32) {
    %c0_i32 = arith.constant 0 : i32
    %c0_i32_0 = arith.constant 0 : i32
    %c0_i32_1 = arith.constant 0 : i32
    return %c0_i32, %c0_i32_0 : i32, i32
  }
  func.func @transform_8(%arg0: i32) -> (i32, i32) {
    %c0_i32 = arith.constant 0 : i32
    %c0_i32_0 = arith.constant 0 : i32
    return %c0_i32, %arg0 : i32, i32
  }
}

</mosaic_0001>

<bundles_post_ra>
// kernel: tpu_custom_call.1
= control target key start
LH: loop header
LB: loop body
LE: loop exit
PB: predicated region body
PF: predicated region fallthrough
CT: control target
= control target key end

     0   :  { %14 = vsyncpa [#allocation4], 0  ;;  %s955_s0 = inlined_call_operand.hbm [shape: f32[8,128], index: 0, kind: input, shape index: {}]   ;;  %s956_s1 = inlined_call_operand.hbm [shape: bf16[128,128], index: 1, kind: input, shape index: {}]   ;;  %s957_s2 = inlined_call_operand.vmem [shape: f32[1,128], index: 2, kind: input, shape index: {}]   ;;  %s958_s3 = inlined_call_operand.hbm [shape: bf16[128,128], index: 3, kind: input, shape index: {}]   ;;  %s959_s4 = inlined_call_operand.vmem [shape: f32[1,128], index: 4, kind: input, shape index: {}]   ;;  %s960_s5 = inlined_call_operand.hbm [shape: bf16[128,256], index: 5, kind: input, shape index: {}]   ;;  %s961_s6 = inlined_call_operand.vmem [shape: f32[1,256], index: 6, kind: input, shape index: {}]   ;;  %s962_s7 = inlined_call_operand.hbm [shape: f32[8,128], index: 7, kind: output, shape index: {0}]   ;;  %s963_s8 = inlined_call_operand.hbm [shape: f32[8,256], index: 8, kind: output, shape index: {1}]  }
   0x1   :  { %15 = vsyncpa [#allocation7], 0 }
   0x2   :  { %16 = vsyncpa [#allocation10], 0 }
   0x3   :  { %17 = vsyncpa [#allocation5], 0 }
   0x4   :  { %18 = vsyncpa [#allocation13], 0  ;;  %s810_s27 = smov [#allocation6]   ;;  %s668_s9 = scalar_lea.hbm %s956_s1, 1024 }
   0x5   :  { %s34_s28 = sshll.u32 %s810_s27, 4  ;;  %p669_p0 = scmp.ne.s32.totalorder %s956_s1, %s668_s9  ;;  %s35_s28 = int_to_ptr.vmem [resolvable:$true] %s34_s28 }
   0x6   :  { %p672_p1 = scmp.lt.u32.totalorder %s668_s9, %s956_s1 }
   0x8   :  { %p674_p2 = pnand %p672_p1, %p669_p0 }
   0xa   :  { %677 = shalt.err (!%p674_p2)
}
   0xb   :  { %s678_s14 = scalar_lea.vmem %s35_s28, 1024  ;;  %p683_p4 = scmp.lt.s32.totalorder %s35_s28, %s35_s28 }
   0xc   :  { %p679_p3 = scmp.ne.s32.totalorder %s35_s28, %s678_s14  ;;  %p684_p5 = scmp.lt.s32.totalorder %s678_s14, %s678_s14 }
   0xe   :  { %p685_p6 = por %p684_p5, %p683_p4 }
  0x10   :  { %p686_p7 = pnand %p685_p6, %p679_p3 }
  0x12   :  { %689 = shalt.err (!%p686_p7)
}
  0x13   :  { %s811_s15 = smov 64   ;;  %s812_s16 = smov 4  }
  0x14   :  { %40 = dma.hbm_to_vmem [thread:$0]  %s956_s1, 1024, %s35_s28, [#allocation7], %s811_s15, %s811_s15, %s812_s16  }
  0x15   :  { %s813_s19 = smov [#allocation3]   ;;  %s814_s21 = smov [#allocation8]  }
  0x16   :  { %s25_s20 = sshll.u32 %s813_s19, 4  ;;  %s48_s22 = sshll.u32 %s814_s21, 4  ;;  %s26_s20 = int_to_ptr.vmem [resolvable:$true] %s25_s20  ;;  %s49_s22 = int_to_ptr.vmem [resolvable:$true] %s48_s22 }
  0x17   :  { %s690_s25 = scalar_lea.hbm %s955_s0, 128 }
  0x18   :  { %p691_p8 = scmp.ne.s32.totalorder %s955_s0, %s690_s25  ;;  %p694_p9 = scmp.lt.u32.totalorder %s690_s25, %s955_s0 }
  0x1a   :  { %p696_p10 = pnand %p694_p9, %p691_p8 }
  0x1c   :  { %699 = shalt.err (!%p696_p10)
}
  0x1d   :  { %s700_s1 = scalar_lea.vmem %s26_s20, 128  ;;  %p705_p12 = scmp.lt.s32.totalorder %s26_s20, %s26_s20 }
  0x1e   :  { %p701_p11 = scmp.ne.s32.totalorder %s26_s20, %s700_s1  ;;  %p706_p13 = scmp.lt.s32.totalorder %s700_s1, %s700_s1 }
  0x20   :  { %p707_p0 = por %p706_p13, %p705_p12 }
  0x22   :  { %p708_p1 = pnand %p707_p0, %p701_p11 }
  0x24   :  { %711 = shalt.err (!%p708_p1)
}
  0x25   :  { %28 = dma.hbm_to_vmem [thread:$0]  %s955_s0, 128, %s26_s20, [#allocation4]  }
  0x26   :  { %s712_s12 = scalar_lea.hbm %s958_s3, 1024 }
  0x27   :  { %p713_p2 = scmp.ne.s32.totalorder %s958_s3, %s712_s12  ;;  %p716_p3 = scmp.lt.u32.totalorder %s712_s12, %s958_s3 }
  0x29   :  { %p718_p4 = pnand %p716_p3, %p713_p2 }
  0x2b   :  { %721 = shalt.err (!%p718_p4)
}
  0x2c   :  { %s722_s19 = scalar_lea.vmem %s49_s22, 1024  ;;  %p727_p6 = scmp.lt.s32.totalorder %s49_s22, %s49_s22 }
  0x2d   :  { %p723_p5 = scmp.ne.s32.totalorder %s49_s22, %s722_s19  ;;  %p728_p7 = scmp.lt.s32.totalorder %s722_s19, %s722_s19 }
  0x2f   :  { %p729_p8 = por %p728_p7, %p727_p6 }
  0x31   :  { %p730_p9 = pnand %p729_p8, %p723_p5 }
  0x33   :  { %733 = shalt.err (!%p730_p9)
}
  0x34   :  { %54 = dma.hbm_to_vmem [thread:$0]  %s958_s3, 1024, %s49_s22, [#allocation7], %s811_s15, %s811_s15, %s812_s16  }
  0x35   :  { %s815_s21 = smov [#allocation9]   ;;  %s734_s26 = scalar_lea.hbm %s960_s5, 2048 }
  0x36   :  { %s62_s23 = sshll.u32 %s815_s21, 4  ;;  %p735_p10 = scmp.ne.s32.totalorder %s960_s5, %s734_s26  ;;  %s63_s23 = int_to_ptr.vmem [resolvable:$true] %s62_s23 }
  0x37   :  { %p738_p11 = scmp.lt.u32.totalorder %s734_s26, %s960_s5 }
  0x39   :  { %p740_p12 = pnand %p738_p11, %p735_p10 }
  0x3b   :  { %743 = shalt.err (!%p740_p12)
}
  0x3c   :  { %s744_s28 = scalar_lea.vmem %s63_s23, 2048  ;;  %p749_p0 = scmp.lt.s32.totalorder %s63_s23, %s63_s23 }
  0x3d   :  { %p745_p13 = scmp.ne.s32.totalorder %s63_s23, %s744_s28  ;;  %p750_p1 = scmp.lt.s32.totalorder %s744_s28, %s744_s28 }
  0x3f   :  { %p751_p2 = por %p750_p1, %p749_p0 }
  0x41   :  { %p752_p3 = pnand %p751_p2, %p745_p13 }
  0x43   :  { %755 = shalt.err (!%p752_p3)
}
  0x44   :  { %s816_s3 = smov 128   ;;  %s817_s15 = smov 8  }
  0x45   :  { %68 = dma.hbm_to_vmem [thread:$0]  %s960_s5, 2048, %s63_s23, [#allocation10], %s816_s3, %s816_s3, %s817_s15  }
  0x46   :  { %800 = dma.done.wait [#allocation4], 128  }
  0x47   :  { %801 = vsyncadd [#allocation4], 4294967168 }
  0x48   :  { %802 = dma.done.wait [#allocation7], 2048  }
  0x49   :  { %803 = vsyncadd [#allocation7], 4294965248 }
  0x4a   :  { %804 = dma.done.wait [#allocation10], 2048  }
  0x4b   :  { %805 = vsyncadd [#allocation10], 4294965248  ;;  %v818_v0 = vmov 0.0   ;;  %vm819_vm0 = vmmov 0   ;;  %v620_v1 = vld [vmem:[#allocation6] sm:$0xff]   ;;  %v621_v2 = vld [vmem:[#allocation6 + $0x8] sm:$0xff]  }
  0x4c   :  { %567 = vmatprep.subr.bf16.mxu0 %v818_v0  ;;  %583 = vmatprep.mubr.msk.bf16.mxu0 %vm819_vm0, %v818_v0  ;;  %v622_v3 = vld [vmem:[#allocation6 + $0x10] sm:$0xff]   ;;  %v623_v4 = vld [vmem:[#allocation6 + $0x18] sm:$0xff]   ;;  %v624_v5 = vld [vmem:[#allocation6 + $0x20] sm:$0xff]   ;;  %v820_v47 = vmov 0   ;;  %s821_s11 = smov [#allocation11]  }
  0x4d   :  { %587 = vmatprep.subr.bf16.mxu1 %v818_v0  ;;  %603 = vmatprep.mubr.msk.bf16.mxu1 %vm819_vm0, %v818_v0  ;;  %v625_v6 = vld [vmem:[#allocation6 + $0x28] sm:$0xff]   ;;  %v626_v7 = vld [vmem:[#allocation6 + $0x30] sm:$0xff]   ;;  %v627_v8 = vld [vmem:[#allocation6 + $0x38] sm:$0xff]   ;;  %s488_s12 = sshll.u32 %s821_s11, 4  ;;  %s489_s12 = int_to_ptr.vmem [resolvable:$true] %s488_s12 }
  0x4e   :  { %568 = vmatpush3.bf16.msra.mxu0 %v620_v1  ;;  %v88_v9 = vld [vmem:[#allocation3] sm:$0xff]  ;;  %v628_v11 = vld [vmem:[#allocation8] sm:$0xff]   ;;  %v629_v12 = vld [vmem:[#allocation8 + $0x8] sm:$0xff]   ;;  %p761_p5 = scmp.lt.s32.totalorder %s489_s12, %s489_s12 }
  0x4f   :  { %569 = vmatprep.subr.bf16.mxu0 %v818_v0  ;;  %v89_v10 = vpack.c.bf16 %v88_v9, %v88_v9  ;;  %588 = vmatpush3.bf16.msra.mxu1 %v628_v11  ;;  %v630_v13 = vld [vmem:[#allocation8 + $0x10] sm:$0xff]   ;;  %v631_v14 = vld [vmem:[#allocation8 + $0x18] sm:$0xff]   ;;  %v632_v15 = vld [vmem:[#allocation8 + $0x20] sm:$0xff]  }
  0x50   :  { %589 = vmatprep.subr.bf16.mxu1 %v818_v0  ;;  %v633_v16 = vld [vmem:[#allocation8 + $0x28] sm:$0xff]   ;;  %v634_v17 = vld [vmem:[#allocation8 + $0x30] sm:$0xff]   ;;  %v635_v18 = vld [vmem:[#allocation8 + $0x38] sm:$0xff]  }
  0x51   :  { %v513_v19 = vld [vmem:[%s957_s2] ss:$0 sm:$0xff]  ;;  %v638_v31 = vld [vmem:[#allocation9 + $0x4] ss:$8 sps:$4 sm:$0xff]   ;;  %v636_v32 = vld [vmem:[#allocation9] ss:$8 sps:$4 sm:$0xff]  }
  0x52   :  { %570 = vmatpush3.bf16.msra.mxu0 %v621_v2  ;;  %v641_v33 = vld [vmem:[#allocation9 + $0x14] ss:$8 sps:$4 sm:$0xff]   ;;  %v639_v34 = vld [vmem:[#allocation9 + $0x10] ss:$8 sps:$4 sm:$0xff]   ;;  %v644_v35 = vld [vmem:[#allocation9 + $0x24] ss:$8 sps:$4 sm:$0xff]  }
  0x53   :  { %571 = vmatprep.subr.bf16.mxu0 %v818_v0  ;;  %590 = vmatpush3.bf16.msra.mxu1 %v629_v12  ;;  %v642_v36 = vld [vmem:[#allocation9 + $0x20] ss:$8 sps:$4 sm:$0xff]   ;;  %v647_v37 = vld [vmem:[#allocation9 + $0x34] ss:$8 sps:$4 sm:$0xff]   ;;  %v645_v38 = vld [vmem:[#allocation9 + $0x30] ss:$8 sps:$4 sm:$0xff]  }
  0x54   :  { %591 = vmatprep.subr.bf16.mxu1 %v818_v0  ;;  %v650_v39 = vld [vmem:[#allocation9 + $0x44] ss:$8 sps:$4 sm:$0xff]   ;;  %v648_v40 = vld [vmem:[#allocation9 + $0x40] ss:$8 sps:$4 sm:$0xff]   ;;  %v653_v41 = vld [vmem:[#allocation9 + $0x54] ss:$8 sps:$4 sm:$0xff]  }
  0x55   :  { %v651_v42 = vld [vmem:[#allocation9 + $0x50] ss:$8 sps:$4 sm:$0xff]   ;;  %v656_v43 = vld [vmem:[#allocation9 + $0x64] ss:$8 sps:$4 sm:$0xff]   ;;  %v654_v44 = vld [vmem:[#allocation9 + $0x60] ss:$8 sps:$4 sm:$0xff]  }
  0x56   :  { %572 = vmatpush3.bf16.msra.mxu0 %v622_v3  ;;  %v659_v45 = vld [vmem:[#allocation9 + $0x74] ss:$8 sps:$4 sm:$0xff]   ;;  %v657_v46 = vld [vmem:[#allocation9 + $0x70] ss:$8 sps:$4 sm:$0xff]  }
  0x57   :  { %573 = vmatprep.subr.bf16.mxu0 %v818_v0  ;;  %592 = vmatpush3.bf16.msra.mxu1 %v630_v13  ;;  %v523_v48 = vld [vmem:[%s959_s4] ss:$0 sm:$0xff]  ;;  %s756_s4 = scalar_lea.vmem %s489_s12, 128 }
  0x58   :  { %593 = vmatprep.subr.bf16.mxu1 %v818_v0  ;;  %p757_p4 = scmp.ne.s32.totalorder %s489_s12, %s756_s4  ;;  %p762_p6 = scmp.lt.s32.totalorder %s756_s4, %s756_s4 }
  0x5a   :  { %574 = vmatpush3.bf16.msra.mxu0 %v623_v4  ;;  %p763_p7 = por %p762_p6, %p761_p5 }
  0x5b   :  { %575 = vmatprep.subr.bf16.mxu0 %v818_v0  ;;  %594 = vmatpush3.bf16.msra.mxu1 %v631_v14 }
  0x5c   :  { %595 = vmatprep.subr.bf16.mxu1 %v818_v0  ;;  %p764_p8 = pnand %p763_p7, %p757_p4 }
  0x5e   :  { %576 = vmatpush3.bf16.msra.mxu0 %v624_v5 }
  0x5f   :  { %577 = vmatprep.subr.bf16.mxu0 %v818_v0  ;;  %596 = vmatpush3.bf16.msra.mxu1 %v632_v15 }
  0x60   :  { %597 = vmatprep.subr.bf16.mxu1 %v818_v0 }
  0x62   :  { %578 = vmatpush3.bf16.msra.mxu0 %v625_v6 }
  0x63   :  { %579 = vmatprep.subr.bf16.mxu0 %v818_v0  ;;  %598 = vmatpush3.bf16.msra.mxu1 %v633_v16 }
  0x64   :  { %599 = vmatprep.subr.bf16.mxu1 %v818_v0 }
  0x66   :  { %580 = vmatpush3.bf16.msra.mxu0 %v626_v7 }
  0x67   :  { %581 = vmatprep.subr.bf16.mxu0 %v818_v0  ;;  %600 = vmatpush3.bf16.msra.mxu1 %v634_v17 }
  0x68   :  { %601 = vmatprep.subr.bf16.mxu1 %v818_v0 }
  0x6a   :  { %582 = vmatpush3.bf16.msra.mxu0 %v627_v8 }
  0x6b   :  { %602 = vmatpush3.bf16.msra.mxu1 %v635_v18  ;;  %439 = vmatprep.subr.bf16.mxu0 %v638_v31 }
  0x6d   :  { %584 = vmatmul.mubr.bf16.vlgmr.msra.gmra.mrb[0].mxu0 %v89_v10 }
  0x6e   :  { %440 = vmatpush1.bf16.msra.mxu0 %v636_v32  ;;  %471 = vmatprep.mubr.bf16.mxu0 %v820_v47 }
  0x6f   :  { %441 = vmatprep.subr.bf16.mxu0 %v641_v33 }
  0x72   :  { %442 = vmatpush1.bf16.msra.mxu0 %v639_v34 }
  0x73   :  { %443 = vmatprep.subr.bf16.mxu0 %v644_v35 }
  0x76   :  { %444 = vmatpush1.bf16.msra.mxu0 %v642_v36 }
  0x77   :  { %445 = vmatprep.subr.bf16.mxu0 %v647_v37 }
  0x7a   :  { %446 = vmatpush1.bf16.msra.mxu0 %v645_v38 }
  0x7b   :  { %447 = vmatprep.subr.bf16.mxu0 %v650_v39 }
  0x7e   :  { %448 = vmatpush1.bf16.msra.mxu0 %v648_v40 }
  0x7f   :  { %449 = vmatprep.subr.bf16.mxu0 %v653_v41 }
  0x82   :  { %450 = vmatpush1.bf16.msra.mxu0 %v651_v42 }
  0x83   :  { %451 = vmatprep.subr.bf16.mxu0 %v656_v43 }
  0x86   :  { %452 = vmatpush1.bf16.msra.mxu0 %v654_v44 }
  0x87   :  { %453 = vmatprep.subr.bf16.mxu0 %v659_v45 }
  0x8a   :  { %454 = vmatpush1.bf16.msra.mxu0 %v657_v46 }
 0x140   :  { %v195_v20 = vpop.f32.mrb[0].mxu0 }
 0x141   :  { %v196_v21 = vadd.f32 %v513_v19, %v195_v20  ;;  %v585_v22 = vpop.f32.mrb[1].mxu0 }
 0x142   :  { %v198_v23 = vpop.f32.mrb[2].mxu0 }
 0x143   :  { %v522_v24 = vmul.f32 -1.442695, %v196_v21  ;;  %v586_v25 = vpop.f32.mrb[3].mxu0 }
 0x145   :  { %660 = vpow2.f32 %v522_v24 }
 0x14f   :  { %v661_v26 = vpop.eup %660 }
 0x150   :  { %v204_v27 = vadd.f32 1.0, %v661_v26 }
 0x152   :  { %662 = vrcp.f32 %v204_v27 }
 0x15c   :  { %v663_v28 = vpop.eup %662 }
 0x15d   :  { %v207_v29 = vmul.f32 %v663_v28, %v196_v21 }
 0x15f   :  { %v208_v30 = vpack.c.bf16 %v207_v29, %v207_v29 }
 0x161   :  { %604 = vmatmul.mubr.bf16.vlgmr.msra.gmra.mrb[0].mxu1 %v208_v30 }
 0x234   :  { %v314_v49 = vpop.f32.mrb[0].mxu1 }
 0x235   :  { %v315_v50 = vadd.f32 %v523_v48, %v314_v49  ;;  %v605_v51 = vpop.f32.mrb[1].mxu1 }
 0x236   :  { %v317_v52 = vpop.f32.mrb[2].mxu1 }
 0x237   :  { %v532_v53 = vmul.f32 -1.442695, %v315_v50  ;;  %320 = vst [vmem:[#allocation11] sm:$0xff] %v315_v50  ;;  %v606_v54 = vpop.f32.mrb[3].mxu1 }
 0x239   :  { %664 = vpow2.f32 %v532_v53 }
 0x243   :  { %v665_v55 = vpop.eup %664 }
 0x244   :  { %v324_v56 = vadd.f32 1.0, %v665_v55 }
 0x246   :  { %666 = vrcp.f32 %v324_v56 }
 0x250   :  { %v667_v57 = vpop.eup %666 }
 0x251   :  { %v327_v58 = vmul.f32 %v667_v57, %v315_v50 }
 0x253   :  { %v328_v59 = vpack.c.bf16 %v327_v58, %v327_v58 }
 0x255   :  { %329 = vst [vmem:[#allocation2] sm:$0xf] %v328_v59 }
 0x25c   :  { %v330_v60 = vld [vmem:[#allocation2] sm:$0xf] }
 0x25d   :  { %472 = vmatmul.mubr.bf16.vlgmr.msra.gmra.mrb[4].mxu0 %v330_v60 }
 0x25e   :  { %767 = shalt.err (!%p764_p8)
}
 0x25f   :  { %s768_s17 = scalar_lea.hbm %s962_s7, 128 }
 0x260   :  { %p769_p9 = scmp.ne.s32.totalorder %s962_s7, %s768_s17  ;;  %p772_p10 = scmp.lt.u32.totalorder %s768_s17, %s962_s7 }
 0x262   :  { %p774_p11 = pnand %p772_p10, %p769_p9 }
 0x264   :  { %777 = shalt.err (!%p774_p11)
}
 0x265   :  { %491 = dma.vmem_to_hbm [thread:$0]  %s489_s12, 128, %s962_s7, [#allocation5]   ;;  %v349_v61 = vlaneseq  ;;  %v347_v0 = vld [vmem:[%s961_s6] sm:$0x3] }
 0x266   :  { %s822_s26 = smov [#allocation12]  }
 0x267   :  { %v350_v62 = vshrl.u32 %v349_v61, 7  ;;  %s498_s27 = sshll.u32 %s822_s26, 4  ;;  %s499_s27 = int_to_ptr.vmem [resolvable:$true] %s498_s27 }
 0x268   :  { %s778_s7 = scalar_lea.vmem %s499_s27, 256  ;;  %p783_p13 = scmp.lt.s32.totalorder %s499_s27, %s499_s27 }
 0x269   :  { %v351_v63 = vsub.s32 0, %v350_v62  ;;  %v355_v1 = vsub.s32 1, %v350_v62  ;;  %p779_p12 = scmp.ne.s32.totalorder %s499_s27, %s778_s7  ;;  %p784_p0 = scmp.lt.s32.totalorder %s778_s7, %s778_s7 }
 0x26b   :  { %v352_v2 = vrot.slane %v347_v0, %v351_v63  ;;  %v356_v3 = vrot.slane %v347_v0, %v355_v1  ;;  %p785_p1 = por %p784_p0, %p783_p13 }
 0x26d   :  { %p786_p2 = pnand %p785_p1, %p779_p12 }
 0x330   :  { %v473_v4 = vpop.f32.mrb[4].mxu0 }
 0x331   :  { %v474_v5 = vadd.f32 %v473_v4, %v352_v2  ;;  %v475_v6 = vpop.f32.mrb[5].mxu0 }
 0x332   :  { %v476_v7 = vadd.f32 %v475_v6, %v356_v3  ;;  %v477_v8 = vpop.f32.mrb[6].mxu0 }
 0x333   :  { %480 = vst [vmem:[#allocation12] sm:$0xff] %v474_v5  ;;  %v478_v9 = vpop.f32.mrb[7].mxu0 }
 0x334   :  { %481 = vst [vmem:[#allocation12 + $0x8] sm:$0xff] %v476_v7 }
 0x335   :  { %789 = shalt.err (!%p786_p2)
}
 0x336   :  { %s790_s30 = scalar_lea.hbm %s963_s8, 256 }
 0x337   :  { %p791_p3 = scmp.ne.s32.totalorder %s963_s8, %s790_s30  ;;  %p794_p4 = scmp.lt.u32.totalorder %s790_s30, %s963_s8 }
 0x339   :  { %p796_p5 = pnand %p794_p4, %p791_p3 }
 0x33b   :  { %799 = shalt.err (!%p796_p5)
}
 0x33c   :  { %501 = dma.vmem_to_hbm [thread:$0]  %s499_s27, 256, %s963_s8, [#allocation13]  }
 0x33d   :  { %806 = dma.done.wait [#allocation5], 128  }
 0x33e   :  { %807 = vsyncadd [#allocation5], 4294967168 }
 0x33f   :  { %808 = dma.done.wait [#allocation13], 256  }
 0x340   :  { %809 = vsyncadd [#allocation13], 4294967040 }
 0x341   :  { %508 = vsyncpa [#allocation4], 1 }
 0x342   :  { %509 = vsyncpa [#allocation7], 1 }
 0x343   :  { %510 = vsyncpa [#allocation10], 1 }
 0x344   :  { %511 = vsyncpa [#allocation5], 1 }
 0x345   :  { %512 = vsyncpa [#allocation13], 1 }

</bundles_post_ra>
